<compile_context>
chip_gen: v5e
topology: v5e:2x2
jax: 0.10.0
libtpu: 0.0.40
codegen_flags: <defaults>
</compile_context>

<pallas_src>
import jax
import jax.numpy as jnp
from jax.experimental import pallas as pl
from jax.experimental.pallas import tpu as pltpu

LANE = 128


def _round_up(n, m):
    return ((n + m - 1) // m) * m


def mlp_kernel(x_ref, *refs):
    """Fused MLP. refs = (w1, b1, ..., w6, b6, o_ref). Unrolled at trace time."""
    o_ref = refs[-1]
    wb = refs[:-1]
    n_layers = len(wb) // 2
    h = x_ref[...].astype(jnp.float32)
    for li in range(n_layers):
        w_ref = wb[2 * li]
        b_ref = wb[2 * li + 1]
        # Cast activations to the weight dtype (bf16 fast path) right before
        # the MXU matmul; accumulate in f32; bias + ReLU in f32 on the VPU.
        y = jnp.dot(h.astype(w_ref.dtype), w_ref[...],
                    preferred_element_type=jnp.float32) + b_ref[...]
        h = jnp.maximum(y, 0.0) if li < n_layers - 1 else y
    o_ref[...] = h.astype(o_ref.dtype)


def pad_params(params, use_bf16):
    """Zero-pad every layer's in/out dims to multiples of 128 (lane-dense)."""
    padded = []
    for w, b in params:
        k, n = w.shape
        kp, np_ = _round_up(k, LANE), _round_up(n, LANE)
        wp = jnp.zeros((kp, np_), jnp.float32).at[:k, :n].set(w)
        bp = jnp.zeros((1, np_), jnp.float32).at[:, :n].set(jnp.reshape(b, (1, -1)))
        if use_bf16:
            wp = wp.astype(jnp.bfloat16)   # MXU operands; accumulation stays f32
        padded.append((wp, bp))
    return padded


def imitation_model_forward(x, params, *, tm=512, use_bf16=True,
                            vmem_limit_bytes=48 * 1024 * 1024):
    """x: (B, input_size) f32. params: list of (W_(in,out), b_(1,out)) f32."""
    B, in_dim = x.shape
    out_dim = params[-1][0].shape[1]

    padded = pad_params(params, use_bf16)
    in_p = padded[0][0].shape[0]
    out_p = padded[-1][0].shape[1]

    # Batch tile: as large as requested, but never bigger than the (8-aligned)
    # batch itself; the batch is zero-padded up to a multiple of the tile.
    tm_eff = min(tm, _round_up(B, 8))
    Bp = _round_up(B, tm_eff)

    xp = jnp.zeros((Bp, in_p), jnp.float32).at[:B, :in_dim].set(x)

    # Activations tiled over the batch; weights/biases are full blocks with a
    # constant index_map so they stay resident in VMEM across grid steps.
    in_specs = [pl.BlockSpec((tm_eff, in_p), lambda i: (i, 0))]
    flat = []
    for w, b in padded:
        in_specs.append(pl.BlockSpec(w.shape, lambda i: (0, 0)))
        in_specs.append(pl.BlockSpec(b.shape, lambda i: (0, 0)))
        flat.extend([w, b])
    out_specs = pl.BlockSpec((tm_eff, out_p), lambda i: (i, 0))

    out = pl.pallas_call(
        mlp_kernel,
        out_shape=jax.ShapeDtypeStruct((Bp, out_p), jnp.float32),
        grid=(Bp // tm_eff,),
        in_specs=in_specs,
        out_specs=out_specs,
        compiler_params=pltpu.CompilerParams(
            dimension_semantics=("parallel",),
            vmem_limit_bytes=vmem_limit_bytes,
        ),
    )(xp, *flat)
    # Strip batch and class padding outside the kernel.
    return out[:B, :out_dim]


def init_params(key, input_size, output_size):
    """Deterministic synthetic params matching ImitationModel's layer shapes."""
    dims = [input_size, 64, 128, 256, 128, 64, output_size]
    params = []
    for li in range(len(dims) - 1):
        key, kw, kb = jax.random.split(key, 3)
        fan_in = dims[li]
        bound = 1.0 / (fan_in ** 0.5)   # torch.nn.Linear default-ish init
        w = jax.random.uniform(kw, (dims[li], dims[li + 1]),
                               minval=-bound, maxval=bound, dtype=jnp.float32)
        b = jax.random.uniform(kb, (1, dims[li + 1]),
                               minval=-bound, maxval=bound, dtype=jnp.float32)
        params.append((w, b))
    return params


def reference_forward(x, params):
    h = x
    for i, (w, b) in enumerate(params):
        h = h @ w + b
        if i < len(params) - 1:
            h = jnp.maximum(h, 0.0)
    return h


if __name__ == "__main__":
    key = jax.random.PRNGKey(0)
    batch = 40        # deliberately not a multiple of 8/128 -> exercises padding
    input_size = 16   # stand-in for X_test.shape[1] (CSV feature count)
    output_size = 8   # stand-in for max(y_test)+1 (number of classes)

    kx, kp = jax.random.split(key)
    x = jax.random.normal(kx, (batch, input_size), dtype=jnp.float32)
    params = init_params(kp, input_size, output_size)

    ref = reference_forward(x, params)

    # f32 path: must match the pure-JAX reference tightly.
    out_f32 = jax.block_until_ready(
        imitation_model_forward(x, params, tm=512, use_bf16=False))
    assert out_f32.shape == (batch, output_size)
    assert jnp.allclose(out_f32, ref, atol=1e-4, rtol=1e-4), "f32 kernel mismatch"

    # bf16-matmul fast path (v6e/v7x): f32 accumulation, looser tolerance.
    out_bf16 = jax.block_until_ready(
        imitation_model_forward(x, params, tm=512, use_bf16=True))
    assert out_bf16.shape == (batch, output_size)
    assert jnp.allclose(out_bf16, ref, atol=5e-2, rtol=5e-2), "bf16 kernel mismatch"

    print("KERNEL_OK")
</pallas_src>

<mosaic_0001>
module attributes {stable_mosaic.version = 11 : i64} {
  func.func @mlp_kernel(%arg0: i32, %arg1: memref<40x128xf32, #tpu.memory_space<vmem>>, %arg2: memref<128x128xf32, #tpu.memory_space<vmem>>, %arg3: memref<1x128xf32, #tpu.memory_space<vmem>>, %arg4: memref<128x128xf32, #tpu.memory_space<vmem>>, %arg5: memref<1x128xf32, #tpu.memory_space<vmem>>, %arg6: memref<128x256xf32, #tpu.memory_space<vmem>>, %arg7: memref<1x256xf32, #tpu.memory_space<vmem>>, %arg8: memref<256x128xf32, #tpu.memory_space<vmem>>, %arg9: memref<1x128xf32, #tpu.memory_space<vmem>>, %arg10: memref<128x128xf32, #tpu.memory_space<vmem>>, %arg11: memref<1x128xf32, #tpu.memory_space<vmem>>, %arg12: memref<128x128xf32, #tpu.memory_space<vmem>>, %arg13: memref<1x128xf32, #tpu.memory_space<vmem>>, %arg14: memref<40x128xf32, #tpu.memory_space<vmem>>) attributes {dimension_semantics = [#tpu.dimension_semantics<parallel>], iteration_bounds = array<i64: 1>, scalar_prefetch = 0 : i64, scratch_operands = 0 : i64, tpu.core_type = #tpu.core_type<tc>, window_params = [{transform_indices = @transform_0, window_bounds = array<i64: 40, 128>}, {pipeline_mode = #tpu.pipeline_mode<synchronous>, transform_indices = @transform_1, window_bounds = array<i64: 128, 128>}, {pipeline_mode = #tpu.pipeline_mode<synchronous>, transform_indices = @transform_2, window_bounds = array<i64: 1, 128>}, {pipeline_mode = #tpu.pipeline_mode<synchronous>, transform_indices = @transform_3, window_bounds = array<i64: 128, 128>}, {pipeline_mode = #tpu.pipeline_mode<synchronous>, transform_indices = @transform_4, window_bounds = array<i64: 1, 128>}, {pipeline_mode = #tpu.pipeline_mode<synchronous>, transform_indices = @transform_5, window_bounds = array<i64: 128, 256>}, {pipeline_mode = #tpu.pipeline_mode<synchronous>, transform_indices = @transform_6, window_bounds = array<i64: 1, 256>}, {pipeline_mode = #tpu.pipeline_mode<synchronous>, transform_indices = @transform_7, window_bounds = array<i64: 256, 128>}, {pipeline_mode = #tpu.pipeline_mode<synchronous>, transform_indices = @transform_8, window_bounds = array<i64: 1, 128>}, {pipeline_mode = #tpu.pipeline_mode<synchronous>, transform_indices = @transform_9, window_bounds = array<i64: 128, 128>}, {pipeline_mode = #tpu.pipeline_mode<synchronous>, transform_indices = @transform_10, window_bounds = array<i64: 1, 128>}, {pipeline_mode = #tpu.pipeline_mode<synchronous>, transform_indices = @transform_11, window_bounds = array<i64: 128, 128>}, {pipeline_mode = #tpu.pipeline_mode<synchronous>, transform_indices = @transform_12, window_bounds = array<i64: 1, 128>}, {transform_indices = @transform_13, window_bounds = array<i64: 40, 128>}]} {
    %c0 = arith.constant 0 : index
    %c0_0 = arith.constant 0 : index
    %0 = vector.load %arg1[%c0, %c0_0] : memref<40x128xf32, #tpu.memory_space<vmem>>, vector<40x128xf32>
    %c0_1 = arith.constant 0 : index
    %c0_2 = arith.constant 0 : index
    %1 = vector.load %arg2[%c0_1, %c0_2] : memref<128x128xf32, #tpu.memory_space<vmem>>, vector<128x128xf32>
    %cst = arith.constant dense<0.000000e+00> : vector<40x128xf32>
    %2 = tpu.matmul %0, %1, %cst {dimension_numbers = #tpu.dot_dimension_numbers<[1], [0], [0], [1], [0, 0, 1, 1], [], []>} : vector<40x128xf32>, vector<128x128xf32>, vector<40x128xf32> -> vector<40x128xf32>
    %c0_3 = arith.constant 0 : index
    %c0_4 = arith.constant 0 : index
    %3 = vector.load %arg3[%c0_3, %c0_4] : memref<1x128xf32, #tpu.memory_space<vmem>>, vector<1x128xf32>
    %4 = vector.broadcast %3 : vector<1x128xf32> to vector<40x128xf32>
    %5 = arith.addf %2, %4 : vector<40x128xf32>
    %cst_5 = arith.constant 0.000000e+00 : f32
    %6 = vector.broadcast %cst_5 : f32 to vector<40x128xf32>
    %7 = arith.maximumf %5, %6 : vector<40x128xf32>
    %c0_6 = arith.constant 0 : index
    %c0_7 = arith.constant 0 : index
    %8 = vector.load %arg4[%c0_6, %c0_7] : memref<128x128xf32, #tpu.memory_space<vmem>>, vector<128x128xf32>
    %cst_8 = arith.constant dense<0.000000e+00> : vector<40x128xf32>
    %9 = tpu.matmul %7, %8, %cst_8 {dimension_numbers = #tpu.dot_dimension_numbers<[1], [0], [0], [1], [0, 0, 1, 1], [], []>} : vector<40x128xf32>, vector<128x128xf32>, vector<40x128xf32> -> vector<40x128xf32>
    %c0_9 = arith.constant 0 : index
    %c0_10 = arith.constant 0 : index
    %10 = vector.load %arg5[%c0_9, %c0_10] : memref<1x128xf32, #tpu.memory_space<vmem>>, vector<1x128xf32>
    %11 = vector.broadcast %10 : vector<1x128xf32> to vector<40x128xf32>
    %12 = arith.addf %9, %11 : vector<40x128xf32>
    %cst_11 = arith.constant 0.000000e+00 : f32
    %13 = vector.broadcast %cst_11 : f32 to vector<40x128xf32>
    %14 = arith.maximumf %12, %13 : vector<40x128xf32>
    %c0_12 = arith.constant 0 : index
    %c0_13 = arith.constant 0 : index
    %15 = vector.load %arg6[%c0_12, %c0_13] : memref<128x256xf32, #tpu.memory_space<vmem>>, vector<128x256xf32>
    %cst_14 = arith.constant dense<0.000000e+00> : vector<40x256xf32>
    %16 = tpu.matmul %14, %15, %cst_14 {dimension_numbers = #tpu.dot_dimension_numbers<[1], [0], [0], [1], [0, 0, 1, 1], [], []>} : vector<40x128xf32>, vector<128x256xf32>, vector<40x256xf32> -> vector<40x256xf32>
    %c0_15 = arith.constant 0 : index
    %c0_16 = arith.constant 0 : index
    %17 = vector.load %arg7[%c0_15, %c0_16] : memref<1x256xf32, #tpu.memory_space<vmem>>, vector<1x256xf32>
    %18 = vector.broadcast %17 : vector<1x256xf32> to vector<40x256xf32>
    %19 = arith.addf %16, %18 : vector<40x256xf32>
    %cst_17 = arith.constant 0.000000e+00 : f32
    %20 = vector.broadcast %cst_17 : f32 to vector<40x256xf32>
    %21 = arith.maximumf %19, %20 : vector<40x256xf32>
    %c0_18 = arith.constant 0 : index
    %c0_19 = arith.constant 0 : index
    %22 = vector.load %arg8[%c0_18, %c0_19] : memref<256x128xf32, #tpu.memory_space<vmem>>, vector<256x128xf32>
    %cst_20 = arith.constant dense<0.000000e+00> : vector<40x128xf32>
    %23 = tpu.matmul %21, %22, %cst_20 {dimension_numbers = #tpu.dot_dimension_numbers<[1], [0], [0], [1], [0, 0, 1, 1], [], []>} : vector<40x256xf32>, vector<256x128xf32>, vector<40x128xf32> -> vector<40x128xf32>
    %c0_21 = arith.constant 0 : index
    %c0_22 = arith.constant 0 : index
    %24 = vector.load %arg9[%c0_21, %c0_22] : memref<1x128xf32, #tpu.memory_space<vmem>>, vector<1x128xf32>
    %25 = vector.broadcast %24 : vector<1x128xf32> to vector<40x128xf32>
    %26 = arith.addf %23, %25 : vector<40x128xf32>
    %cst_23 = arith.constant 0.000000e+00 : f32
    %27 = vector.broadcast %cst_23 : f32 to vector<40x128xf32>
    %28 = arith.maximumf %26, %27 : vector<40x128xf32>
    %c0_24 = arith.constant 0 : index
    %c0_25 = arith.constant 0 : index
    %29 = vector.load %arg10[%c0_24, %c0_25] : memref<128x128xf32, #tpu.memory_space<vmem>>, vector<128x128xf32>
    %cst_26 = arith.constant dense<0.000000e+00> : vector<40x128xf32>
    %30 = tpu.matmul %28, %29, %cst_26 {dimension_numbers = #tpu.dot_dimension_numbers<[1], [0], [0], [1], [0, 0, 1, 1], [], []>} : vector<40x128xf32>, vector<128x128xf32>, vector<40x128xf32> -> vector<40x128xf32>
    %c0_27 = arith.constant 0 : index
    %c0_28 = arith.constant 0 : index
    %31 = vector.load %arg11[%c0_27, %c0_28] : memref<1x128xf32, #tpu.memory_space<vmem>>, vector<1x128xf32>
    %32 = vector.broadcast %31 : vector<1x128xf32> to vector<40x128xf32>
    %33 = arith.addf %30, %32 : vector<40x128xf32>
    %cst_29 = arith.constant 0.000000e+00 : f32
    %34 = vector.broadcast %cst_29 : f32 to vector<40x128xf32>
    %35 = arith.maximumf %33, %34 : vector<40x128xf32>
    %c0_30 = arith.constant 0 : index
    %c0_31 = arith.constant 0 : index
    %36 = vector.load %arg12[%c0_30, %c0_31] : memref<128x128xf32, #tpu.memory_space<vmem>>, vector<128x128xf32>
    %cst_32 = arith.constant dense<0.000000e+00> : vector<40x128xf32>
    %37 = tpu.matmul %35, %36, %cst_32 {dimension_numbers = #tpu.dot_dimension_numbers<[1], [0], [0], [1], [0, 0, 1, 1], [], []>} : vector<40x128xf32>, vector<128x128xf32>, vector<40x128xf32> -> vector<40x128xf32>
    %c0_33 = arith.constant 0 : index
    %c0_34 = arith.constant 0 : index
    %38 = vector.load %arg13[%c0_33, %c0_34] : memref<1x128xf32, #tpu.memory_space<vmem>>, vector<1x128xf32>
    %39 = vector.broadcast %38 : vector<1x128xf32> to vector<40x128xf32>
    %40 = arith.addf %37, %39 : vector<40x128xf32>
    %c0_35 = arith.constant 0 : index
    %c0_36 = arith.constant 0 : index
    %41 = vector.load %arg14[%c0_35, %c0_36] : memref<40x128xf32, #tpu.memory_space<vmem>>, vector<40x128xf32>
    tpu.vector_store %arg14[%c0_35, %c0_36], %40 {strides = array<i32>} : memref<40x128xf32, #tpu.memory_space<vmem>>, vector<40x128xf32>,
    return
  }
  func.func @transform_0(%arg0: i32) -> (i32, i32) {
    %c0_i32 = arith.constant 0 : i32
    %c0_i32_0 = arith.constant 0 : i32
    return %arg0, %c0_i32 : i32, i32
  }
  func.func @transform_1(%arg0: i32) -> (i32, i32) {
    %c0_i32 = arith.constant 0 : i32
    %c0_i32_0 = arith.constant 0 : i32
    %c0_i32_1 = arith.constant 0 : i32
    return %c0_i32, %c0_i32_0 : i32, i32
  }
  func.func @transform_2(%arg0: i32) -> (i32, i32) {
    %c0_i32 = arith.constant 0 : i32
    %c0_i32_0 = arith.constant 0 : i32
    %c0_i32_1 = arith.constant 0 : i32
    return %c0_i32, %c0_i32_0 : i32, i32
  }
  func.func @transform_3(%arg0: i32) -> (i32, i32) {
    %c0_i32 = arith.constant 0 : i32
    %c0_i32_0 = arith.constant 0 : i32
    %c0_i32_1 = arith.constant 0 : i32
    return %c0_i32, %c0_i32_0 : i32, i32
  }
  func.func @transform_4(%arg0: i32) -> (i32, i32) {
    %c0_i32 = arith.constant 0 : i32
    %c0_i32_0 = arith.constant 0 : i32
    %c0_i32_1 = arith.constant 0 : i32
    return %c0_i32, %c0_i32_0 : i32, i32
  }
  func.func @transform_5(%arg0: i32) -> (i32, i32) {
    %c0_i32 = arith.constant 0 : i32
    %c0_i32_0 = arith.constant 0 : i32
    %c0_i32_1 = arith.constant 0 : i32
    return %c0_i32, %c0_i32_0 : i32, i32
  }
  func.func @transform_6(%arg0: i32) -> (i32, i32) {
    %c0_i32 = arith.constant 0 : i32
    %c0_i32_0 = arith.constant 0 : i32
    %c0_i32_1 = arith.constant 0 : i32
    return %c0_i32, %c0_i32_0 : i32, i32
  }
  func.func @transform_7(%arg0: i32) -> (i32, i32) {
    %c0_i32 = arith.constant 0 : i32
    %c0_i32_0 = arith.constant 0 : i32
    %c0_i32_1 = arith.constant 0 : i32
    return %c0_i32, %c0_i32_0 : i32, i32
  }
  func.func @transform_8(%arg0: i32) -> (i32, i32) {
    %c0_i32 = arith.constant 0 : i32
    %c0_i32_0 = arith.constant 0 : i32
    %c0_i32_1 = arith.constant 0 : i32
    return %c0_i32, %c0_i32_0 : i32, i32
  }
  func.func @transform_9(%arg0: i32) -> (i32, i32) {
    %c0_i32 = arith.constant 0 : i32
    %c0_i32_0 = arith.constant 0 : i32
    %c0_i32_1 = arith.constant 0 : i32
    return %c0_i32, %c0_i32_0 : i32, i32
  }
  func.func @transform_10(%arg0: i32) -> (i32, i32) {
    %c0_i32 = arith.constant 0 : i32
    %c0_i32_0 = arith.constant 0 : i32
    %c0_i32_1 = arith.constant 0 : i32
    return %c0_i32, %c0_i32_0 : i32, i32
  }
  func.func @transform_11(%arg0: i32) -> (i32, i32) {
    %c0_i32 = arith.constant 0 : i32
    %c0_i32_0 = arith.constant 0 : i32
    %c0_i32_1 = arith.constant 0 : i32
    return %c0_i32, %c0_i32_0 : i32, i32
  }
  func.func @transform_12(%arg0: i32) -> (i32, i32) {
    %c0_i32 = arith.constant 0 : i32
    %c0_i32_0 = arith.constant 0 : i32
    %c0_i32_1 = arith.constant 0 : i32
    return %c0_i32, %c0_i32_0 : i32, i32
  }
  func.func @transform_13(%arg0: i32) -> (i32, i32) {
    %c0_i32 = arith.constant 0 : i32
    %c0_i32_0 = arith.constant 0 : i32
    return %arg0, %c0_i32 : i32, i32
  }
}

</mosaic_0001>

<bundles_post_ra>
// kernel: tpu_custom_call.1
= control target key start
LH: loop header
LB: loop body
LE: loop exit
PB: predicated region body
PF: predicated region fallthrough
CT: control target
= control target key end

     0   :  { %18 = vsyncpa [#allocation3], 0  ;;  %s1047_s0 = inlined_call_operand.hbm [shape: f32[40,128], index: 0, kind: input, shape index: {}]   ;;  %s1048_s1 = inlined_call_operand.hbm [shape: f32[128,128], index: 1, kind: input, shape index: {}]   ;;  %s1049_s2 = inlined_call_operand.vmem [shape: f32[1,128], index: 2, kind: input, shape index: {}]   ;;  %s1050_s3 = inlined_call_operand.hbm [shape: f32[128,128], index: 3, kind: input, shape index: {}]   ;;  %s1051_s4 = inlined_call_operand.hbm [shape: f32[1,128], index: 4, kind: input, shape index: {}]   ;;  %s1052_s5 = inlined_call_operand.hbm [shape: f32[128,256], index: 5, kind: input, shape index: {}]   ;;  %s1053_s6 = inlined_call_operand.vmem [shape: f32[1,256], index: 6, kind: input, shape index: {}]   ;;  %s1054_s7 = inlined_call_operand.hbm [shape: f32[256,128], index: 7, kind: input, shape index: {}]   ;;  %s1055_s8 = inlined_call_operand.vmem [shape: f32[1,128], index: 8, kind: input, shape index: {}]   ;;  %s1056_s9 = inlined_call_operand.hbm [shape: f32[128,128], index: 9, kind: input, shape index: {}]   ;;  %s1057_s10 = inlined_call_operand.vmem [shape: f32[1,128], index: 10, kind: input, shape index: {}]   ;;  %s1058_s11 = inlined_call_operand.hbm [shape: f32[128,128], index: 11, kind: input, shape index: {}]   ;;  %s1059_s12 = inlined_call_operand.vmem [shape: f32[1,128], index: 12, kind: input, shape index: {}]   ;;  %s1060_s13 = inlined_call_operand.hbm [shape: f32[40,128], index: 13, kind: output, shape index: {}]  }
   0x1   :  { %19 = vsyncpa [#allocation6], 0 }
   0x2   :  { %20 = vsyncpa [#allocation9], 0 }
   0x3   :  { %21 = vsyncpa [#allocation12], 0 }
   0x4   :  { %22 = vsyncpa [#allocation15], 0 }
   0x5   :  { %23 = vsyncpa [#allocation4], 0  ;;  %s41_s27 = sshll.u32 %s1048_s1, 4  ;;  %s887_s28 = smov [#allocation5]   ;;  %s42_s27 = int_to_ptr.hbm [resolvable:$true] %s41_s27 }
   0x6   :  { %s43_s29 = sshll.u32 %s887_s28, 4  ;;  %s70_s15 = sshll.u32 %s1051_s4, 4  ;;  %s44_s29 = int_to_ptr.vmem [resolvable:$true] %s43_s29  ;;  %s71_s15 = int_to_ptr.hbm [resolvable:$true] %s70_s15 }
   0x7   :  { %s888_s16 = smov 128   ;;  %s889_s17 = smov 8  }
   0x8   :  { %49 = dma.hbm_to_vmem [thread:$0]  %s42_s27, 2048, %s44_s29, [#allocation6], %s888_s16, %s888_s16, %s889_s17  }
   0x9   :  { %s890_s18 = smov [#allocation8]   ;;  %s95_s1 = sshll.u32 %s1054_s7, 4  ;;  %s96_s1 = int_to_ptr.hbm [resolvable:$true] %s95_s1 }
   0xa   :  { %s72_s19 = sshll.u32 %s890_s18, 4  ;;  %s28_s4 = sshll.u32 %s1047_s0, 4  ;;  %s73_s19 = int_to_ptr.vmem [resolvable:$true] %s72_s19  ;;  %s29_s4 = int_to_ptr.hbm [resolvable:$true] %s28_s4 }
   0xb   :  { %75 = dma.hbm_to_vmem [thread:$0]  %s71_s15, 16, %s73_s19, [#allocation9]  }
   0xc   :  { %s891_s24 = smov [#allocation11]   ;;  %s892_s26 = smov [#allocation2]  }
   0xd   :  { %s97_s25 = sshll.u32 %s891_s24, 4  ;;  %s30_s27 = sshll.u32 %s892_s26, 4  ;;  %s98_s25 = int_to_ptr.vmem [resolvable:$true] %s97_s25  ;;  %s31_s27 = int_to_ptr.vmem [resolvable:$true] %s30_s27 }
   0xe   :  { %103 = dma.hbm_to_vmem [thread:$0]  %s96_s1, 4096, %s98_s25, [#allocation12], %s888_s16, %s888_s16, %s889_s17  }
   0xf   :  { %s56_s7 = sshll.u32 %s1050_s3, 4  ;;  %s80_s14 = sshll.u32 %s1052_s5, 4  ;;  %s57_s7 = int_to_ptr.hbm [resolvable:$true] %s56_s7  ;;  %s81_s14 = int_to_ptr.hbm [resolvable:$true] %s80_s14 }
  0x10   :  { %36 = dma.hbm_to_vmem [thread:$0]  %s29_s4, 640, %s31_s27, [#allocation3], %s888_s16, %s888_s16, %s889_s17  }
  0x11   :  { %s893_s15 = smov [#allocation7]   ;;  %s894_s19 = smov [#allocation10]  }
  0x12   :  { %s58_s18 = sshll.u32 %s893_s15, 4  ;;  %s82_s3 = sshll.u32 %s894_s19, 4  ;;  %s59_s18 = int_to_ptr.vmem [resolvable:$true] %s58_s18  ;;  %s83_s3 = int_to_ptr.vmem [resolvable:$true] %s82_s3 }
  0x13   :  { %64 = dma.hbm_to_vmem [thread:$0]  %s57_s7, 2048, %s59_s18, [#allocation6], %s888_s16, %s888_s16, %s889_s17  }
  0x14   :  { %s895_s20 = smov 256   ;;  %s896_s21 = smov 16  }
  0x15   :  { %88 = dma.hbm_to_vmem [thread:$0]  %s81_s14, 4096, %s83_s3, [#allocation9], %s895_s20, %s895_s20, %s896_s21  }
  0x16   :  { %s110_s23 = sshll.u32 %s1056_s9, 4  ;;  %s897_s5 = smov [#allocation13]   ;;  %s111_s23 = int_to_ptr.hbm [resolvable:$true] %s110_s23 }
  0x17   :  { %s112_s4 = sshll.u32 %s897_s5, 4  ;;  %s125_s26 = sshll.u32 %s1058_s11, 4  ;;  %s113_s4 = int_to_ptr.vmem [resolvable:$true] %s112_s4  ;;  %s126_s26 = int_to_ptr.hbm [resolvable:$true] %s125_s26 }
  0x18   :  { %118 = dma.hbm_to_vmem [thread:$0]  %s111_s23, 2048, %s113_s4, [#allocation12], %s888_s16, %s888_s16, %s889_s17  }
  0x19   :  { %s898_s27 = smov [#allocation14]  }
  0x1a   :  { %s127_s28 = sshll.u32 %s898_s27, 4  ;;  %s128_s28 = int_to_ptr.vmem [resolvable:$true] %s127_s28 }
  0x1b   :  { %133 = dma.hbm_to_vmem [thread:$0]  %s126_s26, 2048, %s128_s28, [#allocation15], %s888_s16, %s888_s16, %s889_s17  }
  0x1c   :  { %875 = dma.done.wait [#allocation3], 640  }
  0x1d   :  { %876 = vsyncadd [#allocation3], 4294966656 }
  0x1e   :  { %877 = dma.done.wait [#allocation6], 4096  }
  0x1f   :  { %878 = vsyncadd [#allocation6], 4294963200 }
  0x20   :  { %879 = dma.done.wait [#allocation9], 4112  }
  0x21   :  { %880 = vsyncadd [#allocation9], 4294963184 }
  0x22   :  { %881 = dma.done.wait [#allocation12], 6144  }
  0x23   :  { %882 = vsyncadd [#allocation12], 4294961152 }
  0x24   :  { %883 = dma.done.wait [#allocation15], 2048  }
  0x25   :  { %884 = vsyncadd [#allocation15], 4294965248  ;;  %v188_v0 = vld [vmem:[#allocation5 + $0x78] sm:$0xff]  ;;  %v187_v1 = vld [vmem:[#allocation5 + $0x70] sm:$0xff]  ;;  %s899_s14 = smov [#allocation16]   ;;  %s624_s3 = sshll.u32 %s1060_s13, 4  ;;  %s625_s3 = int_to_ptr.hbm [resolvable:$true] %s624_s3 }
  0x26   :  { %193 = vmatpush.msra.mxu0 %v188_v0  ;;  %v186_v2 = vld [vmem:[#allocation5 + $0x68] sm:$0xff]  ;;  %v185_v3 = vld [vmem:[#allocation5 + $0x60] sm:$0xff]  ;;  %v184_v4 = vld [vmem:[#allocation5 + $0x58] sm:$0xff]  ;;  %s622_s15 = sshll.u32 %s899_s14, 4  ;;  %s623_s15 = int_to_ptr.vmem [resolvable:$true] %s622_s15 }
  0x27   :  { %v183_v5 = vld [vmem:[#allocation5 + $0x50] sm:$0xff]  ;;  %v182_v6 = vld [vmem:[#allocation5 + $0x48] sm:$0xff]  ;;  %v181_v7 = vld [vmem:[#allocation5 + $0x40] sm:$0xff] }
  0x28   :  { %194 = vmatpush.msra.mxu0 %v187_v1  ;;  %v180_v8 = vld [vmem:[#allocation5 + $0x38] sm:$0xff]  ;;  %v179_v9 = vld [vmem:[#allocation5 + $0x30] sm:$0xff]  ;;  %v178_v10 = vld [vmem:[#allocation5 + $0x28] sm:$0xff] }
  0x29   :  { %v177_v11 = vld [vmem:[#allocation5 + $0x20] sm:$0xff]  ;;  %v176_v12 = vld [vmem:[#allocation5 + $0x18] sm:$0xff]  ;;  %v175_v13 = vld [vmem:[#allocation5 + $0x10] sm:$0xff] }
  0x2a   :  { %195 = vmatpush.msra.mxu0 %v186_v2  ;;  %v174_v14 = vld [vmem:[#allocation5 + $0x8] sm:$0xff]  ;;  %v173_v15 = vld [vmem:[#allocation5] sm:$0xff]  ;;  %v168_v16 = vld [vmem:[#allocation2] sm:$0xff] }
  0x2b   :  { %v245_v17 = vld [vmem:[#allocation7 + $0x78] sm:$0xff]  ;;  %v244_v18 = vld [vmem:[#allocation7 + $0x70] sm:$0xff]  ;;  %v243_v19 = vld [vmem:[#allocation7 + $0x68] sm:$0xff] }
  0x2c   :  { %196 = vmatpush.msra.mxu0 %v185_v3  ;;  %250 = vmatpush.msra.mxu1 %v245_v17  ;;  %v242_v20 = vld [vmem:[#allocation7 + $0x60] sm:$0xff]  ;;  %v241_v22 = vld [vmem:[#allocation7 + $0x58] sm:$0xff]  ;;  %v240_v23 = vld [vmem:[#allocation7 + $0x50] sm:$0xff] }
  0x2d   :  { %v169_v21 = vld [vmem:[#allocation2 + $0x8] sm:$0xff]  ;;  %v239_v24 = vld [vmem:[#allocation7 + $0x48] sm:$0xff]  ;;  %v237_v27 = vld [vmem:[#allocation7 + $0x38] sm:$0xff] }
  0x2e   :  { %197 = vmatpush.msra.mxu0 %v184_v4  ;;  %251 = vmatpush.msra.mxu1 %v244_v18  ;;  %v238_v25 = vld [vmem:[#allocation7 + $0x40] sm:$0xff]  ;;  %v170_v26 = vld [vmem:[#allocation2 + $0x10] sm:$0xff]  ;;  %v236_v28 = vld [vmem:[#allocation7 + $0x30] sm:$0xff] }
  0x2f   :  { %v235_v29 = vld [vmem:[#allocation7 + $0x28] sm:$0xff]  ;;  %v234_v30 = vld [vmem:[#allocation7 + $0x20] sm:$0xff]  ;;  %v171_v31 = vld [vmem:[#allocation2 + $0x18] sm:$0xff] }
  0x30   :  { %198 = vmatpush.msra.mxu0 %v183_v5  ;;  %252 = vmatpush.msra.mxu1 %v243_v19  ;;  %v233_v32 = vld [vmem:[#allocation7 + $0x18] sm:$0xff]  ;;  %v232_v34 = vld [vmem:[#allocation7 + $0x10] sm:$0xff]  ;;  %v231_v35 = vld [vmem:[#allocation7 + $0x8] sm:$0xff] }
  0x31   :  { %v172_v33 = vld [vmem:[#allocation2 + $0x20] sm:$0xff]  ;;  %v230_v36 = vld [vmem:[#allocation7] sm:$0xff]  ;;  %v316_v44 = vld [vmem:[#allocation10 + $0xe8] sm:$0xff] }
  0x32   :  { %199 = vmatpush.msra.mxu0 %v182_v6  ;;  %253 = vmatpush.msra.mxu1 %v242_v20  ;;  %v1015_v37 = vld [vmem:[%s1049_s2] ss:$0 sm:$0xff]  ;;  %v318_v42 = vld [vmem:[#allocation10 + $0xf8] sm:$0xff]  ;;  %v315_v43 = vld [vmem:[#allocation10 + $0xe0] sm:$0xff] }
  0x33   :  { %v317_v41 = vld [vmem:[#allocation10 + $0xf0] sm:$0xff]  ;;  %357 = vmatpush.msra.mxu3 %v318_v42  ;;  %v314_v46 = vld [vmem:[#allocation10 + $0xd8] sm:$0xff]  ;;  %v311_v49 = vld [vmem:[#allocation10 + $0xc0] sm:$0xff] }
  0x34   :  { %200 = vmatpush.msra.mxu0 %v181_v7  ;;  %254 = vmatpush.msra.mxu1 %v241_v22  ;;  %v313_v45 = vld [vmem:[#allocation10 + $0xd0] sm:$0xff]  ;;  %v312_v50 = vld [vmem:[#allocation10 + $0xc8] sm:$0xff]  ;;  %v310_v53 = vld [vmem:[#allocation10 + $0xb8] sm:$0xff] }
  0x35   :  { %325 = vmatpush.msra.mxu2 %v317_v41  ;;  %358 = vmatpush.msra.mxu3 %v316_v44  ;;  %v309_v52 = vld [vmem:[#allocation10 + $0xb0] sm:$0xff]  ;;  %v307_v54 = vld [vmem:[#allocation10 + $0xa0] sm:$0xff]  ;;  %v308_v55 = vld [vmem:[#allocation10 + $0xa8] sm:$0xff] }
  0x36   :  { %201 = vmatpush.msra.mxu0 %v180_v8  ;;  %255 = vmatpush.msra.mxu1 %v240_v23  ;;  %v305_v56 = vld [vmem:[#allocation10 + $0x90] sm:$0xff]  ;;  %v306_v57 = vld [vmem:[#allocation10 + $0x98] sm:$0xff]  ;;  %v303_v60 = vld [vmem:[#allocation10 + $0x80] sm:$0xff] }
  0x37   :  { %326 = vmatpush.msra.mxu2 %v315_v43  ;;  %359 = vmatpush.msra.mxu3 %v314_v46  ;;  %v304_v61 = vld [vmem:[#allocation10 + $0x88] sm:$0xff]  ;;  %v301_v63 = vld [vmem:[#allocation10 + $0x70] sm:$0xff]  ;;  %v302_v0 = vld [vmem:[#allocation10 + $0x78] sm:$0xff] }
  0x38   :  { %202 = vmatpush.msra.mxu0 %v179_v9  ;;  %256 = vmatpush.msra.mxu1 %v239_v24  ;;  %v299_v1 = vld [vmem:[#allocation10 + $0x60] sm:$0xff]  ;;  %v300_v2 = vld [vmem:[#allocation10 + $0x68] sm:$0xff]  ;;  %v297_v3 = vld [vmem:[#allocation10 + $0x50] sm:$0xff] }
  0x39   :  { %327 = vmatpush.msra.mxu2 %v313_v45  ;;  %360 = vmatpush.msra.mxu3 %v312_v50  ;;  %v298_v4 = vld [vmem:[#allocation10 + $0x58] sm:$0xff]  ;;  %v295_v7 = vld [vmem:[#allocation10 + $0x40] sm:$0xff]  ;;  %v296_v8 = vld [vmem:[#allocation10 + $0x48] sm:$0xff] }
  0x3a   :  { %203 = vmatpush.msra.mxu0 %v178_v10  ;;  %257 = vmatpush.msra.mxu1 %v238_v25  ;;  %v293_v10 = vld [vmem:[#allocation10 + $0x30] sm:$0xff]  ;;  %v290_v18 = vld [vmem:[#allocation10 + $0x18] sm:$0xff]  ;;  %v287_v19 = vld [vmem:[#allocation10] sm:$0xff] }
  0x3b   :  { %328 = vmatpush.msra.mxu2 %v311_v49  ;;  %361 = vmatpush.msra.mxu3 %v310_v53  ;;  %v289_v17 = vld [vmem:[#allocation10 + $0x10] sm:$0xff]  ;;  %v288_v20 = vld [vmem:[#allocation10 + $0x8] sm:$0xff]  ;;  %v414_v25 = vld [vmem:[#allocation11 + $0x78] sm:$0xff] }
  0x3c   :  { %204 = vmatpush.msra.mxu0 %v177_v11  ;;  %258 = vmatpush.msra.mxu1 %v237_v27  ;;  %v294_v11 = vld [vmem:[#allocation10 + $0x38] sm:$0xff]  ;;  %v413_v27 = vld [vmem:[#allocation11 + $0x70] sm:$0xff]  ;;  %v424_v41 = vld [vmem:[#allocation11 + $0xc8] sm:$0xff] }
  0x3d   :  { %329 = vmatpush.msra.mxu2 %v309_v52  ;;  %362 = vmatpush.msra.mxu3 %v308_v55  ;;  %v407_v44 = vld [vmem:[#allocation11 + $0x40] sm:$0xff]  ;;  %v405_v49 = vld [vmem:[#allocation11 + $0x30] sm:$0xff]  ;;  %v420_v52 = vld [vmem:[#allocation11 + $0xa8] sm:$0xff] }
  0x3e   :  { %205 = vmatpush.msra.mxu0 %v176_v12  ;;  %259 = vmatpush.msra.mxu1 %v236_v28  ;;  %v429_v28 = vld [vmem:[#allocation11 + $0xf0] sm:$0xff]  ;;  %v423_v45 = vld [vmem:[#allocation11 + $0xc0] sm:$0xff] }
  0x3f   :  { %330 = vmatpush.msra.mxu2 %v307_v54  ;;  %363 = vmatpush.msra.mxu3 %v306_v57  ;;  %v421_v50 = vld [vmem:[#allocation11 + $0xb0] sm:$0xff]  ;;  %v403_v55 = vld [vmem:[#allocation11 + $0x20] sm:$0xff] }
  0x40   :  { %206 = vmatpush.msra.mxu0 %v175_v13  ;;  %260 = vmatpush.msra.mxu1 %v235_v29  ;;  %v412_v29 = vld [vmem:[#allocation11 + $0x68] sm:$0xff] }
  0x41   :  { %331 = vmatpush.msra.mxu2 %v305_v56  ;;  %364 = vmatpush.msra.mxu3 %v304_v61  ;;  %v419_v56 = vld [vmem:[#allocation11 + $0xa0] sm:$0xff] }
  0x42   :  { %207 = vmatpush.msra.mxu0 %v174_v14  ;;  %261 = vmatpush.msra.mxu1 %v234_v30  ;;  %v428_v30 = vld [vmem:[#allocation11 + $0xe8] sm:$0xff] }
  0x43   :  { %332 = vmatpush.msra.mxu2 %v303_v60  ;;  %365 = vmatpush.msra.mxu3 %v302_v0  ;;  %v401_v60 = vld [vmem:[#allocation11 + $0x10] sm:$0xff] }
  0x44   :  { %208 = vmatpush.msra.mxu0 %v173_v15  ;;  %262 = vmatpush.msra.mxu1 %v233_v32  ;;  %v291_v15 = vld [vmem:[#allocation10 + $0x20] sm:$0xff]  ;;  %v417_v0 = vld [vmem:[#allocation11 + $0x90] sm:$0xff] }
  0x45   :  { %209 = vmatmul.f32.vlgmr.msra.gmra.mxu0 %v168_v16  ;;  %333 = vmatpush.msra.mxu2 %v301_v63  ;;  %v292_v16 = vld [vmem:[#allocation10 + $0x28] sm:$0xff] }
  0x46   :  { %263 = vmatpush.msra.mxu1 %v232_v34  ;;  %366 = vmatpush.msra.mxu3 %v300_v2  ;;  %v427_v34 = vld [vmem:[#allocation11 + $0xe0] sm:$0xff]  ;;  %v416_v2 = vld [vmem:[#allocation11 + $0x88] sm:$0xff] }
  0x47   :  { %334 = vmatpush.msra.mxu2 %v299_v1  ;;  %435 = vmatpush.msrb.mxu0 %v414_v25  ;;  %v400_v1 = vld [vmem:[#allocation11 + $0x8] sm:$0xff]  ;;  %v514_v25 = vld [vmem:[#allocation13 + $0x50] sm:$0xff] }
  0x48   :  { %264 = vmatpush.msra.mxu1 %v231_v35  ;;  %367 = vmatpush.msra.mxu3 %v298_v4  ;;  %v415_v4 = vld [vmem:[#allocation11 + $0x80] sm:$0xff] }
  0x49   :  { %335 = vmatpush.msra.mxu2 %v297_v3  ;;  %436 = vmatpush.msrb.mxu0 %v413_v27  ;;  %v399_v3 = vld [vmem:[#allocation11] sm:$0xff] }
  0x4a   :  { %265 = vmatpush.msra.mxu1 %v230_v36  ;;  %368 = vmatpush.msra.mxu3 %v296_v8  ;;  %v410_v36 = vld [vmem:[#allocation11 + $0x58] sm:$0xff] }
  0x4b   :  { %336 = vmatpush.msra.mxu2 %v295_v7  ;;  %437 = vmatpush.msrb.mxu0 %v412_v29 }
  0x4c   :  { %369 = vmatpush.msra.mxu3 %v294_v11 }
  0x4d   :  { %212 = vmatmul.f32.gmra.mxu0 %v169_v21  ;;  %337 = vmatpush.msra.mxu2 %v293_v10  ;;  %v1022_v21 = vld [vmem:[#allocation8] ss:$0 sm:$0xff] }
  0x4e   :  { %370 = vmatpush.msra.mxu3 %v292_v16  ;;  %v517_v16 = vld [vmem:[#allocation13 + $0x68] sm:$0xff] }
  0x4f   :  { %338 = vmatpush.msra.mxu2 %v291_v15  ;;  %v518_v15 = vld [vmem:[#allocation13 + $0x70] sm:$0xff] }
  0x50   :  { %371 = vmatpush.msra.mxu3 %v290_v18 }
  0x51   :  { %339 = vmatpush.msra.mxu2 %v289_v17 }
  0x52   :  { %372 = vmatpush.msra.mxu3 %v288_v20 }
  0x53   :  { %340 = vmatpush.msra.mxu2 %v287_v19 }
  0x55   :  { %215 = vmatmul.f32.gmra.mxu0 %v170_v26  ;;  %v430_v26 = vld [vmem:[#allocation11 + $0xf8] sm:$0xff] }
  0x56   :  { %467 = vmatpush.msrb.mxu1 %v430_v26  ;;  %v513_v26 = vld [vmem:[#allocation13 + $0x48] sm:$0xff] }
  0x58   :  { %468 = vmatpush.msrb.mxu1 %v429_v28 }
  0x5a   :  { %469 = vmatpush.msrb.mxu1 %v428_v30 }
  0x5c   :  { %470 = vmatpush.msrb.mxu1 %v427_v34  ;;  %v511_v34 = vld [vmem:[#allocation13 + $0x38] sm:$0xff] }
  0x5d   :  { %218 = vmatmul.f32.gmra.mxu0 %v171_v31 }
  0x65   :  { %221 = vmatmul.f32.gmra.mxu0 %v172_v33  ;;  %v411_v33 = vld [vmem:[#allocation11 + $0x60] sm:$0xff] }
  0x66   :  { %438 = vmatpush.msrb.mxu0 %v411_v33 }
  0x68   :  { %439 = vmatpush.msrb.mxu0 %v410_v36  ;;  %v509_v36 = vld [vmem:[#allocation13 + $0x28] sm:$0xff] }
  0xc2   :  { %v210_v38 = vpop.f32.mrf.mxu0 }
  0xc3   :  { %v211_v39 = vadd.f32 %v1015_v37, %v210_v38  ;;  %v409_v38 = vld [vmem:[#allocation11 + $0x50] sm:$0xff] }
  0xc4   :  { %440 = vmatpush.msrb.mxu0 %v409_v38 }
  0xc5   :  { %v225_v40 = vmax.f32 %v211_v39, 0.0  ;;  %v425_v39 = vld [vmem:[#allocation11 + $0xd0] sm:$0xff] }
  0xc7   :  { %266 = vmatmul.f32.vlgmr.msra.gmra.mxu1 %v225_v40  ;;  %v408_v40 = vld [vmem:[#allocation11 + $0x48] sm:$0xff] }
  0xc8   :  { %441 = vmatpush.msrb.mxu0 %v408_v40 }
  0xca   :  { %v213_v47 = vpop.f32.mrf.mxu0  ;;  %442 = vmatpush.msrb.mxu0 %v407_v44  ;;  %v507_v44 = vld [vmem:[#allocation13 + $0x18] sm:$0xff] }
  0xcb   :  { %v214_v48 = vadd.f32 %v1015_v37, %v213_v47  ;;  %v406_v47 = vld [vmem:[#allocation11 + $0x38] sm:$0xff] }
  0xcc   :  { %443 = vmatpush.msrb.mxu0 %v406_v47 }
  0xcd   :  { %v226_v51 = vmax.f32 %v214_v48, 0.0  ;;  %v422_v48 = vld [vmem:[#allocation11 + $0xb8] sm:$0xff] }
  0xce   :  { %444 = vmatpush.msrb.mxu0 %v405_v49 }
  0xcf   :  { %269 = vmatmul.f32.gmra.mxu1 %v226_v51  ;;  %v404_v51 = vld [vmem:[#allocation11 + $0x28] sm:$0xff] }
  0xd0   :  { %445 = vmatpush.msrb.mxu0 %v404_v51  ;;  %v506_v51 = vld [vmem:[#allocation13 + $0x10] sm:$0xff] }
  0xd2   :  { %v216_v58 = vpop.f32.mrf.mxu0  ;;  %446 = vmatpush.msrb.mxu0 %v403_v55 }
  0xd3   :  { %v217_v59 = vadd.f32 %v1015_v37, %v216_v58  ;;  %v402_v58 = vld [vmem:[#allocation11 + $0x18] sm:$0xff] }
  0xd4   :  { %447 = vmatpush.msrb.mxu0 %v402_v58 }
  0xd5   :  { %v227_v62 = vmax.f32 %v217_v59, 0.0  ;;  %v418_v59 = vld [vmem:[#allocation11 + $0x98] sm:$0xff] }
  0xd6   :  { %448 = vmatpush.msrb.mxu0 %v401_v60  ;;  %v576_v60 = vld [vmem:[#allocation14 + $0x78] sm:$0xff] }
  0xd7   :  { %272 = vmatmul.f32.gmra.mxu1 %v227_v62  ;;  %581 = vmatpush.msrb.mxu3 %v576_v60 }
  0xd8   :  { %449 = vmatpush.msrb.mxu0 %v400_v1  ;;  %v574_v1 = vld [vmem:[#allocation14 + $0x68] sm:$0xff] }
  0xda   :  { %v219_v5 = vpop.f32.mrf.mxu0  ;;  %450 = vmatpush.msrb.mxu0 %v399_v3  ;;  %v573_v3 = vld [vmem:[#allocation14 + $0x60] sm:$0xff] }
  0xdb   :  { %v220_v6 = vadd.f32 %v1015_v37, %v219_v5  ;;  %v319_v5 = vld [vmem:[%s1053_s6] sm:$0x3] }
  0xdc   :  { %v322_v7 = vperm.slane %v319_v5, 1 }
  0xdd   :  { %v228_v9 = vmax.f32 %v220_v6, 0.0  ;;  %v321_v6 = vperm.slane %v319_v5, 0  ;;  %v572_v5 = vld [vmem:[#allocation14 + $0x58] sm:$0xff] }
  0xdf   :  { %275 = vmatmul.f32.gmra.mxu1 %v228_v9 }
  0xe2   :  { %v222_v12 = vpop.f32.mrf.mxu0 }
  0xe3   :  { %v223_v13 = vadd.f32 %v1015_v37, %v222_v12  ;;  %v426_v37 = vld [vmem:[#allocation11 + $0xd8] sm:$0xff] }
  0xe4   :  { %471 = vmatpush.msrb.mxu1 %v426_v37 }
  0xe5   :  { %v229_v14 = vmax.f32 %v223_v13, 0.0 }
  0xe6   :  { %472 = vmatpush.msrb.mxu1 %v425_v39 }
  0xe7   :  { %278 = vmatmul.f32.gmra.mxu1 %v229_v14  ;;  %v519_v14 = vld [vmem:[#allocation13 + $0x78] sm:$0xff] }
  0xe8   :  { %473 = vmatpush.msrb.mxu1 %v424_v41  ;;  %524 = vmatpush.msrb.mxu2 %v519_v14  ;;  %v508_v41 = vld [vmem:[#allocation13 + $0x20] sm:$0xff]  ;;  %v568_v14 = vld [vmem:[#allocation14 + $0x38] sm:$0xff] }
  0xea   :  { %474 = vmatpush.msrb.mxu1 %v423_v45  ;;  %525 = vmatpush.msrb.mxu2 %v518_v15  ;;  %v567_v15 = vld [vmem:[#allocation14 + $0x30] sm:$0xff] }
  0xec   :  { %475 = vmatpush.msrb.mxu1 %v422_v48  ;;  %526 = vmatpush.msrb.mxu2 %v517_v16 }
  0xee   :  { %476 = vmatpush.msrb.mxu1 %v421_v50 }
  0xf0   :  { %477 = vmatpush.msrb.mxu1 %v420_v52  ;;  %v505_v52 = vld [vmem:[#allocation13 + $0x8] sm:$0xff] }
  0xf2   :  { %478 = vmatpush.msrb.mxu1 %v419_v56 }
  0xf4   :  { %479 = vmatpush.msrb.mxu1 %v418_v59 }
  0xf6   :  { %480 = vmatpush.msrb.mxu1 %v417_v0 }
  0xf8   :  { %481 = vmatpush.msrb.mxu1 %v416_v2 }
  0xfa   :  { %482 = vmatpush.msrb.mxu1 %v415_v4 }
 0x144   :  { %v267_v22 = vpop.f32.mrf.mxu1 }
 0x145   :  { %v268_v23 = vadd.f32 %v1022_v21, %v267_v22 }
 0x147   :  { %v282_v24 = vmax.f32 %v268_v23, 0.0 }
 0x149   :  { %341 = vmatmul.f32.vlgmr.msra.gmra.mxu2 %v282_v24  ;;  %373 = vmatmul.f32.vlgmr.msra.gmra.mxu3 %v282_v24  ;;  %v515_v24 = vld [vmem:[#allocation13 + $0x58] sm:$0xff] }
 0x14c   :  { %v270_v31 = vpop.f32.mrf.mxu1 }
 0x14d   :  { %v271_v32 = vadd.f32 %v1022_v21, %v270_v31  ;;  %v512_v31 = vld [vmem:[#allocation13 + $0x40] sm:$0xff] }
 0x14f   :  { %v283_v35 = vmax.f32 %v271_v32, 0.0 }
 0x151   :  { %344 = vmatmul.f32.gmra.mxu2 %v283_v35  ;;  %376 = vmatmul.f32.gmra.mxu3 %v283_v35  ;;  %v510_v35 = vld [vmem:[#allocation13 + $0x30] sm:$0xff] }
 0x154   :  { %v273_v42 = vpop.f32.mrf.mxu1 }
 0x155   :  { %v274_v43 = vadd.f32 %v1022_v21, %v273_v42 }
 0x157   :  { %v284_v46 = vmax.f32 %v274_v43, 0.0 }
 0x159   :  { %347 = vmatmul.f32.gmra.mxu2 %v284_v46  ;;  %379 = vmatmul.f32.gmra.mxu3 %v284_v46 }
 0x15c   :  { %v276_v53 = vpop.f32.mrf.mxu1 }
 0x15d   :  { %v277_v54 = vadd.f32 %v1022_v21, %v276_v53  ;;  %v504_v53 = vld [vmem:[#allocation13] sm:$0xff] }
 0x15f   :  { %v285_v57 = vmax.f32 %v277_v54, 0.0  ;;  %v656_v54 = vld [vmem:[%s1055_s8] ss:$0 sm:$0xff] }
 0x161   :  { %350 = vmatmul.f32.gmra.mxu2 %v285_v57  ;;  %382 = vmatmul.f32.gmra.mxu3 %v285_v57 }
 0x164   :  { %v279_v61 = vpop.f32.mrf.mxu1 }
 0x165   :  { %v280_v62 = vadd.f32 %v1022_v21, %v279_v61  ;;  %v516_v21 = vld [vmem:[#allocation13 + $0x60] sm:$0xff]  ;;  %v575_v61 = vld [vmem:[#allocation14 + $0x70] sm:$0xff] }
 0x166   :  { %527 = vmatpush.msrb.mxu2 %v516_v21  ;;  %582 = vmatpush.msrb.mxu3 %v575_v61  ;;  %v565_v21 = vld [vmem:[#allocation14 + $0x20] sm:$0xff] }
 0x167   :  { %v286_v63 = vmax.f32 %v280_v62, 0.0 }
 0x168   :  { %528 = vmatpush.msrb.mxu2 %v515_v24  ;;  %583 = vmatpush.msrb.mxu3 %v574_v1  ;;  %v563_v24 = vld [vmem:[#allocation14 + $0x10] sm:$0xff] }
 0x169   :  { %353 = vmatmul.f32.gmra.mxu2 %v286_v63  ;;  %385 = vmatmul.f32.gmra.mxu3 %v286_v63 }
 0x16a   :  { %529 = vmatpush.msrb.mxu2 %v514_v25  ;;  %584 = vmatpush.msrb.mxu3 %v573_v3 }
 0x16c   :  { %530 = vmatpush.msrb.mxu2 %v513_v26  ;;  %585 = vmatpush.msrb.mxu3 %v572_v5 }
 0x16e   :  { %531 = vmatpush.msrb.mxu2 %v512_v31  ;;  %v561_v31 = vld [vmem:[#allocation14] sm:$0xff] }
 0x170   :  { %532 = vmatpush.msrb.mxu2 %v511_v34 }
 0x172   :  { %533 = vmatpush.msrb.mxu2 %v510_v35 }
 0x174   :  { %534 = vmatpush.msrb.mxu2 %v509_v36 }
 0x176   :  { %535 = vmatpush.msrb.mxu2 %v508_v41 }
 0x178   :  { %536 = vmatpush.msrb.mxu2 %v507_v44 }
 0x17a   :  { %537 = vmatpush.msrb.mxu2 %v506_v51 }
 0x17c   :  { %538 = vmatpush.msrb.mxu2 %v505_v52 }
 0x17e   :  { %539 = vmatpush.msrb.mxu2 %v504_v53 }
 0x1cc   :  { %v342_v8 = vpop.f32.mrf.mxu2  ;;  %v374_v9 = vpop.f32.mrf.mxu3 }
 0x1cd   :  { %v343_v10 = vadd.f32 %v342_v8, %v321_v6  ;;  %v375_v11 = vadd.f32 %v374_v9, %v322_v7 }
 0x1cf   :  { %v389_v12 = vmax.f32 %v343_v10, 0.0  ;;  %v390_v13 = vmax.f32 %v375_v11, 0.0  ;;  %v570_v10 = vld [vmem:[#allocation14 + $0x48] sm:$0xff] }
 0x1d1   :  { %451 = vmatmul.f32.vlgmr.msrb.gmra.mxu0 %v389_v12  ;;  %483 = vmatmul.f32.vlgmr.msrb.gmra.mxu1 %v390_v13  ;;  %v569_v12 = vld [vmem:[#allocation14 + $0x40] sm:$0xff] }
 0x1d4   :  { %v345_v17 = vpop.f32.mrf.mxu2  ;;  %v377_v18 = vpop.f32.mrf.mxu3 }
 0x1d5   :  { %v346_v19 = vadd.f32 %v345_v17, %v321_v6  ;;  %v378_v20 = vadd.f32 %v377_v18, %v322_v7 }
 0x1d7   :  { %v391_v22 = vmax.f32 %v346_v19, 0.0  ;;  %v392_v23 = vmax.f32 %v378_v20, 0.0  ;;  %v566_v19 = vld [vmem:[#allocation14 + $0x28] sm:$0xff] }
 0x1d9   :  { %454 = vmatmul.f32.gmra.mxu0 %v391_v22  ;;  %486 = vmatmul.f32.gmra.mxu1 %v392_v23  ;;  %v564_v23 = vld [vmem:[#allocation14 + $0x18] sm:$0xff] }
 0x1dc   :  { %v348_v27 = vpop.f32.mrf.mxu2  ;;  %v380_v28 = vpop.f32.mrf.mxu3 }
 0x1dd   :  { %v349_v29 = vadd.f32 %v348_v27, %v321_v6  ;;  %v381_v30 = vadd.f32 %v380_v28, %v322_v7 }
 0x1df   :  { %v393_v32 = vmax.f32 %v349_v29, 0.0  ;;  %v394_v33 = vmax.f32 %v381_v30, 0.0  ;;  %v562_v30 = vld [vmem:[#allocation14 + $0x8] sm:$0xff] }
 0x1e1   :  { %457 = vmatmul.f32.gmra.mxu0 %v393_v32  ;;  %489 = vmatmul.f32.gmra.mxu1 %v394_v33  ;;  %v657_v32 = vld [vmem:[%s1057_s10] ss:$0 sm:$0xff] }
 0x1e4   :  { %v351_v37 = vpop.f32.mrf.mxu2  ;;  %v383_v38 = vpop.f32.mrf.mxu3 }
 0x1e5   :  { %v352_v39 = vadd.f32 %v351_v37, %v321_v6  ;;  %v384_v40 = vadd.f32 %v383_v38, %v322_v7 }
 0x1e7   :  { %v395_v42 = vmax.f32 %v352_v39, 0.0  ;;  %v396_v43 = vmax.f32 %v384_v40, 0.0 }
 0x1e9   :  { %460 = vmatmul.f32.gmra.mxu0 %v395_v42  ;;  %492 = vmatmul.f32.gmra.mxu1 %v396_v43 }
 0x1ec   :  { %v354_v45 = vpop.f32.mrf.mxu2  ;;  %v386_v46 = vpop.f32.mrf.mxu3 }
 0x1ed   :  { %v355_v47 = vadd.f32 %v354_v45, %v321_v6  ;;  %v387_v48 = vadd.f32 %v386_v46, %v322_v7  ;;  %v571_v6 = vld [vmem:[#allocation14 + $0x50] sm:$0xff] }
 0x1ee   :  { %586 = vmatpush.msrb.mxu3 %v571_v6 }
 0x1ef   :  { %v397_v49 = vmax.f32 %v355_v47, 0.0  ;;  %v398_v50 = vmax.f32 %v387_v48, 0.0  ;;  %v658_v48 = vld [vmem:[%s1059_s12] ss:$0 sm:$0xff] }
 0x1f0   :  { %587 = vmatpush.msrb.mxu3 %v570_v10 }
 0x1f1   :  { %463 = vmatmul.f32.gmra.mxu0 %v397_v49  ;;  %495 = vmatmul.f32.gmra.mxu1 %v398_v50 }
 0x1f2   :  { %588 = vmatpush.msrb.mxu3 %v569_v12 }
 0x1f4   :  { %589 = vmatpush.msrb.mxu3 %v568_v14 }
 0x1f6   :  { %590 = vmatpush.msrb.mxu3 %v567_v15 }
 0x1f8   :  { %591 = vmatpush.msrb.mxu3 %v566_v19 }
 0x1fa   :  { %592 = vmatpush.msrb.mxu3 %v565_v21 }
 0x1fc   :  { %593 = vmatpush.msrb.mxu3 %v564_v23 }
 0x1fe   :  { %594 = vmatpush.msrb.mxu3 %v563_v24 }
 0x200   :  { %595 = vmatpush.msrb.mxu3 %v562_v30 }
 0x202   :  { %596 = vmatpush.msrb.mxu3 %v561_v31 }
 0x24e   :  { %v452_v55 = vpop.f32.mrf.mxu0  ;;  %v484_v56 = vpop.f32.mrf.mxu1 }
 0x24f   :  { %v453_v57 = vadd.f32 %v656_v54, %v452_v55 }
 0x251   :  { %v485_v58 = vadd.f32 %v484_v56, %v453_v57 }
 0x253   :  { %v499_v59 = vmax.f32 %v485_v58, 0.0 }
 0x255   :  { %540 = vmatmul.f32.vlgmr.msrb.gmra.mxu2 %v499_v59 }
 0x256   :  { %v455_v62 = vpop.f32.mrf.mxu0  ;;  %v487_v63 = vpop.f32.mrf.mxu1 }
 0x257   :  { %v456_v0 = vadd.f32 %v656_v54, %v455_v62 }
 0x259   :  { %v488_v2 = vadd.f32 %v487_v63, %v456_v0 }
 0x25b   :  { %v500_v4 = vmax.f32 %v488_v2, 0.0 }
 0x25d   :  { %543 = vmatmul.f32.gmra.mxu2 %v500_v4 }
 0x25e   :  { %v458_v7 = vpop.f32.mrf.mxu0  ;;  %v490_v8 = vpop.f32.mrf.mxu1 }
 0x25f   :  { %v459_v9 = vadd.f32 %v656_v54, %v458_v7 }
 0x261   :  { %v491_v11 = vadd.f32 %v490_v8, %v459_v9 }
 0x263   :  { %v501_v13 = vmax.f32 %v491_v11, 0.0 }
 0x265   :  { %546 = vmatmul.f32.gmra.mxu2 %v501_v13 }
 0x266   :  { %v461_v16 = vpop.f32.mrf.mxu0  ;;  %v493_v17 = vpop.f32.mrf.mxu1 }
 0x267   :  { %v462_v18 = vadd.f32 %v656_v54, %v461_v16 }
 0x269   :  { %v494_v20 = vadd.f32 %v493_v17, %v462_v18 }
 0x26b   :  { %v502_v22 = vmax.f32 %v494_v20, 0.0 }
 0x26d   :  { %549 = vmatmul.f32.gmra.mxu2 %v502_v22 }
 0x26e   :  { %v464_v25 = vpop.f32.mrf.mxu0  ;;  %v496_v27 = vpop.f32.mrf.mxu1 }
 0x26f   :  { %v465_v26 = vadd.f32 %v656_v54, %v464_v25 }
 0x271   :  { %v497_v28 = vadd.f32 %v496_v27, %v465_v26 }
 0x273   :  { %v503_v29 = vmax.f32 %v497_v28, 0.0 }
 0x275   :  { %552 = vmatmul.f32.gmra.mxu2 %v503_v29 }
 0x2d8   :  { %v541_v33 = vpop.f32.mrf.mxu2 }
 0x2d9   :  { %v542_v34 = vadd.f32 %v657_v32, %v541_v33 }
 0x2db   :  { %v556_v35 = vmax.f32 %v542_v34, 0.0 }
 0x2dd   :  { %597 = vmatmul.f32.vlgmr.msrb.gmra.mxu3 %v556_v35 }
 0x2e0   :  { %v544_v36 = vpop.f32.mrf.mxu2 }
 0x2e1   :  { %v545_v37 = vadd.f32 %v657_v32, %v544_v36 }
 0x2e3   :  { %v557_v38 = vmax.f32 %v545_v37, 0.0 }
 0x2e5   :  { %600 = vmatmul.f32.gmra.mxu3 %v557_v38 }
 0x2e8   :  { %v547_v39 = vpop.f32.mrf.mxu2 }
 0x2e9   :  { %v548_v40 = vadd.f32 %v657_v32, %v547_v39 }
 0x2eb   :  { %v558_v41 = vmax.f32 %v548_v40, 0.0 }
 0x2ed   :  { %603 = vmatmul.f32.gmra.mxu3 %v558_v41 }
 0x2f0   :  { %v550_v42 = vpop.f32.mrf.mxu2 }
 0x2f1   :  { %v551_v43 = vadd.f32 %v657_v32, %v550_v42 }
 0x2f3   :  { %v559_v44 = vmax.f32 %v551_v43, 0.0 }
 0x2f5   :  { %606 = vmatmul.f32.gmra.mxu3 %v559_v44 }
 0x2f8   :  { %v553_v45 = vpop.f32.mrf.mxu2 }
 0x2f9   :  { %v554_v46 = vadd.f32 %v657_v32, %v553_v45 }
 0x2fb   :  { %v560_v47 = vmax.f32 %v554_v46, 0.0 }
 0x2fd   :  { %609 = vmatmul.f32.gmra.mxu3 %v560_v47 }
 0x360   :  { %v598_v49 = vpop.f32.mrf.mxu3 }
 0x361   :  { %v599_v50 = vadd.f32 %v658_v48, %v598_v49 }
 0x363   :  { %613 = vst [vmem:[#allocation16] sm:$0xff] %v599_v50 }
 0x368   :  { %v601_v51 = vpop.f32.mrf.mxu3 }
 0x369   :  { %v602_v52 = vadd.f32 %v658_v48, %v601_v51 }
 0x36b   :  { %614 = vst [vmem:[#allocation16 + $0x8] sm:$0xff] %v602_v52 }
 0x370   :  { %v604_v53 = vpop.f32.mrf.mxu3 }
 0x371   :  { %v605_v54 = vadd.f32 %v658_v48, %v604_v53 }
 0x373   :  { %615 = vst [vmem:[#allocation16 + $0x10] sm:$0xff] %v605_v54 }
 0x378   :  { %v607_v55 = vpop.f32.mrf.mxu3 }
 0x379   :  { %v608_v56 = vadd.f32 %v658_v48, %v607_v55 }
 0x37b   :  { %616 = vst [vmem:[#allocation16 + $0x18] sm:$0xff] %v608_v56 }
 0x380   :  { %v610_v57 = vpop.f32.mrf.mxu3 }
 0x381   :  { %v611_v58 = vadd.f32 %v658_v48, %v610_v57 }
 0x383   :  { %617 = vst [vmem:[#allocation16 + $0x20] sm:$0xff] %v611_v58 }
 0x384   :  { %630 = dma.vmem_to_hbm [thread:$0]  %s623_s15, 640, %s625_s3, [#allocation4], %s888_s16, %s888_s16, %s889_s17  }
 0x385   :  { %885 = dma.done.wait [#allocation4], 640  }
 0x386   :  { %886 = vsyncadd [#allocation4], 4294966656 }
 0x387   :  { %635 = vsyncpa [#allocation3], 1 }
 0x388   :  { %636 = vsyncpa [#allocation6], 1 }
 0x389   :  { %637 = vsyncpa [#allocation9], 1 }
 0x38a   :  { %638 = vsyncpa [#allocation12], 1 }
 0x38b   :  { %639 = vsyncpa [#allocation15], 1 }
 0x38c   :  { %640 = vsyncpa [#allocation4], 1 }

</bundles_post_ra>
